<compile_context>
chip_gen: v6e
topology: v6e:2x2x1
jax: 0.10.0
libtpu: 0.0.40
codegen_flags: <defaults>
</compile_context>

<pallas_src>
import jax
import jax.numpy as jnp
from jax.experimental import pallas as pl
from jax.experimental.pallas import tpu as pltpu


def _round_up(x, m):
    return ((x + m - 1) // m) * m


def _largest_divisor_tile(n, candidates=(1024, 512, 256, 128)):
    """Largest lane-aligned tile that evenly divides n (n is a mult of 128)."""
    for c in candidates:
        if n >= c and n % c == 0:
            return c
    return n


# -----------------------------------------------------------------------------
# Kernel A: input projection xW = x @ [W_ih^T] + (b_ih + b_hh)  (fully parallel)
# -----------------------------------------------------------------------------
def _input_proj_kernel(x_ref, wih_ref, b_ref, xw_ref):
    """x_ref: (Tt, Bp, Ep)  wih_ref: (Ep, 4Hp)  b_ref: (1, 4Hp)
       xw_ref: (Tt, Bp, 4Hp)."""
    tt, bp, ep = x_ref.shape
    g = wih_ref.shape[1]
    x2 = x_ref[...].reshape(tt * bp, ep)              # layout-preserving merge
    xw = jnp.dot(x2, wih_ref[...],
                 preferred_element_type=jnp.float32) + b_ref[...]
    xw_ref[...] = xw.reshape(tt, bp, g)               # one lane-dense store


# -----------------------------------------------------------------------------
# Kernel B: sequential LSTM recurrence, time chunked through the grid.
# -----------------------------------------------------------------------------
def _lstm_recurrent_kernel(xw_ref, whh_ref, hid_ref, h_sc, c_sc):
    """xw_ref: (Tt, Bp, 4Hp)  whh_ref: (Hp, 4Hp)  hid_ref: (Tt, Bp, Hp)
       h_sc / c_sc: (Bp, Hp) VMEM scratch carried across grid steps."""
    tt = xw_ref.shape[0]
    hp = whh_ref.shape[0]

    @pl.when(pl.program_id(0) == 0)
    def _():
        # nn.LSTM default zero initial state.
        h_sc[...] = jnp.zeros_like(h_sc)
        c_sc[...] = jnp.zeros_like(c_sc)

    def step(t, carry):
        h, c = carry
        # Sequential critical path: one small (Bp,Hp)@(Hp,4Hp) MXU push + VPU/EUP.
        gates = xw_ref[t] + jnp.dot(h, whh_ref[...],
                                    preferred_element_type=jnp.float32)
        i_g = jax.nn.sigmoid(gates[:, 0 * hp:1 * hp])
        f_g = jax.nn.sigmoid(gates[:, 1 * hp:2 * hp])
        g_g = jnp.tanh(gates[:, 2 * hp:3 * hp])
        o_g = jax.nn.sigmoid(gates[:, 3 * hp:4 * hp])
        c_new = f_g * c + i_g * g_g
        h_new = o_g * jnp.tanh(c_new)
        hid_ref[t] = h_new                             # dynamic leading-axis store
        return (h_new, c_new)

    # Full unroll only over the small time chunk (Tt <= 8) -> LLO visibility
    # without blowing the 64-vreg budget at long caption lengths.
    h_f, c_f = jax.lax.fori_loop(0, tt, step, (h_sc[...], c_sc[...]), unroll=True)
    h_sc[...] = h_f
    c_sc[...] = c_f


# -----------------------------------------------------------------------------
# Kernel C: vocab projection, tiled over (time chunk, vocab tile), time-major.
# -----------------------------------------------------------------------------
def _vocab_proj_kernel(hid_ref, wlin_ref, blin_ref, out_ref):
    """hid_ref: (Tt, Bp, Hp)  wlin_ref: (Hp, tn)  blin_ref: (1, tn)
       out_ref: (Tt, Bp, tn) -- time-major, one full-block store."""
    tt, bp, hp = hid_ref.shape
    tn = out_ref.shape[-1]
    logits = jnp.dot(hid_ref[...].reshape(tt * bp, hp), wlin_ref[...],
                     preferred_element_type=jnp.float32) + blin_ref[...]
    out_ref[...] = logits.reshape(tt, bp, tn)


# -----------------------------------------------------------------------------
# Wrapper
# -----------------------------------------------------------------------------
def decoder_rnn_forward(features, captions, params, *, time_chunk=4):
    """features: (B, E) f32, captions: (B, Tc) int32 -> logits (B, Tc, V)."""
    emb_table = params["embedding"]          # (V, E)
    w_ih_t = params["w_ih_t"]                # (E, 4H)
    w_hh_t = params["w_hh_t"]                # (H, 4H)
    b_gates = params["b_gates"]              # (1, 4H) (= b_ih + b_hh)
    w_lin_t = params["w_lin_t"]              # (H, V)
    b_lin = params["b_lin"]                  # (1, V)

    E = w_ih_t.shape[0]
    H = w_hh_t.shape[0]
    V = w_lin_t.shape[1]

    # ---- glue (plain JAX): captions[:, :-1] -> embedding -> prepend features
    emb = jnp.take(emb_table, captions[:, :-1], axis=0)             # (B, Tc-1, E)
    inputs = jnp.concatenate([features[:, None, :], emb], axis=1)   # (B, T, E)
    B, T, _ = inputs.shape

    # ---- pad to TPU-friendly shapes ----------------------------------------
    Bp = max(8, _round_up(B, 8))
    Ep = _round_up(E, 128)
    Hp = _round_up(H, 128)
    Vp = _round_up(V, 128)
    tt = min(time_chunk, T)                  # time chunk per grid step
    Tp = _round_up(T, tt)                    # padded T so grid divides evenly
    tn = _largest_divisor_tile(Vp)           # vocab tile (<= 1024 f32)

    x_tbe = jnp.transpose(inputs, (1, 0, 2)).astype(jnp.float32)    # (T, B, E)
    x_p = jnp.pad(x_tbe, ((0, Tp - T), (0, Bp - B), (0, Ep - E)))   # (Tp, Bp, Ep)

    def pad_gate_cols(w, h, hp):
        # (rows, 4h) -> (rows, 4hp), keeping the [i, f, g, o] gate layout.
        return jnp.concatenate(
            [jnp.pad(w[:, k * h:(k + 1) * h], ((0, 0), (0, hp - h)))
             for k in range(4)], axis=1)

    w_ih_p = jnp.pad(pad_gate_cols(w_ih_t, H, Hp), ((0, Ep - E), (0, 0)))  # (Ep, 4Hp)
    w_hh_p = jnp.pad(pad_gate_cols(w_hh_t, H, Hp), ((0, Hp - H), (0, 0)))  # (Hp, 4Hp)
    b_gates_p = pad_gate_cols(b_gates, H, Hp)                              # (1, 4Hp)
    w_lin_p = jnp.pad(w_lin_t, ((0, Hp - H), (0, Vp - V)))                 # (Hp, Vp)
    b_lin_p = jnp.pad(b_lin, ((0, 0), (0, Vp - V)))                        # (1, Vp)
    # NOTE: on v6e/v7x cast w_*_p / b_*_p (and xw/hid matmul operands) to bf16
    # (keep preferred_element_type=f32) for ~2x MXU throughput; kept f32 here
    # so the 1e-4 self-check below is valid.

    n_tc = Tp // tt

    # ---- kernel A: input projection (fully parallel, pipelined over T chunks)
    xw_tbg = pl.pallas_call(
        _input_proj_kernel,
        out_shape=jax.ShapeDtypeStruct((Tp, Bp, 4 * Hp), jnp.float32),
        grid_spec=pltpu.PrefetchScalarGridSpec(
            num_scalar_prefetch=0,
            grid=(n_tc,),
            in_specs=[
                pl.BlockSpec((tt, Bp, Ep), lambda i: (i, 0, 0)),       # x chunk
                pl.BlockSpec((Ep, 4 * Hp), lambda i: (0, 0)),          # W_ih^T
                pl.BlockSpec((1, 4 * Hp), lambda i: (0, 0)),           # gate bias
            ],
            out_specs=pl.BlockSpec((tt, Bp, 4 * Hp), lambda i: (i, 0, 0)),
        ),
        compiler_params=pltpu.CompilerParams(
            dimension_semantics=("parallel",)),
    )(x_p, w_ih_p, b_gates_p)

    # ---- kernel B: sequential recurrence, h/c carried in VMEM scratch -------
    hid_tbh = pl.pallas_call(
        _lstm_recurrent_kernel,
        out_shape=jax.ShapeDtypeStruct((Tp, Bp, Hp), jnp.float32),
        grid_spec=pltpu.PrefetchScalarGridSpec(
            num_scalar_prefetch=0,
            grid=(n_tc,),
            in_specs=[
                pl.BlockSpec((tt, Bp, 4 * Hp), lambda i: (i, 0, 0)),   # xW chunk
                pl.BlockSpec((Hp, 4 * Hp), lambda i: (0, 0)),          # W_hh^T
            ],
            out_specs=pl.BlockSpec((tt, Bp, Hp), lambda i: (i, 0, 0)), # hiddens
            scratch_shapes=[pltpu.VMEM((Bp, Hp), jnp.float32),         # h carry
                            pltpu.VMEM((Bp, Hp), jnp.float32)],        # c carry
        ),
        compiler_params=pltpu.CompilerParams(
            dimension_semantics=("arbitrary",)),       # recurrence is sequential
    )(xw_tbg, w_hh_p)

    # ---- kernel C: vocab projection, (time chunk) x (vocab tile) parallel ---
    out_tm = pl.pallas_call(
        _vocab_proj_kernel,
        out_shape=jax.ShapeDtypeStruct((Tp, Bp, Vp), jnp.float32),
        grid_spec=pltpu.PrefetchScalarGridSpec(
            num_scalar_prefetch=0,
            grid=(n_tc, Vp // tn),
            in_specs=[
                pl.BlockSpec((tt, Bp, Hp), lambda i, j: (i, 0, 0)),    # hiddens
                pl.BlockSpec((Hp, tn), lambda i, j: (0, j)),           # W_lin tile
                pl.BlockSpec((1, tn), lambda i, j: (0, j)),            # b_lin tile
            ],
            out_specs=pl.BlockSpec((tt, Bp, tn), lambda i, j: (i, 0, j)),
        ),
        compiler_params=pltpu.CompilerParams(
            dimension_semantics=("parallel", "parallel")),
    )(hid_tbh, w_lin_p, b_lin_p)

    # Un-pad and swap to batch-first (the single cheap HBM transpose lives here,
    # not as T masked stores inside the kernel).
    return jnp.transpose(out_tm[:T, :B, :V], (1, 0, 2))


# -----------------------------------------------------------------------------
# Pure-JAX reference (mirrors PyTorch semantics) for the correctness check.
# -----------------------------------------------------------------------------
def decoder_rnn_reference(features, captions, params):
    emb = jnp.take(params["embedding"], captions[:, :-1], axis=0)
    inputs = jnp.concatenate([features[:, None, :], emb], axis=1)   # (B, T, E)
    B, T, _ = inputs.shape
    H = params["w_hh_t"].shape[0]

    def step(carry, x_t):
        h, c = carry
        gates = x_t @ params["w_ih_t"] + h @ params["w_hh_t"] + params["b_gates"]
        i = jax.nn.sigmoid(gates[:, 0 * H:1 * H])
        f = jax.nn.sigmoid(gates[:, 1 * H:2 * H])
        g = jnp.tanh(gates[:, 2 * H:3 * H])
        o = jax.nn.sigmoid(gates[:, 3 * H:4 * H])
        c_new = f * c + i * g
        h_new = o * jnp.tanh(c_new)
        return (h_new, c_new), h_new

    h0 = jnp.zeros((B, H), jnp.float32)
    c0 = jnp.zeros((B, H), jnp.float32)
    _, hs = jax.lax.scan(step, (h0, c0), jnp.transpose(inputs, (1, 0, 2)))
    hiddens = jnp.transpose(hs, (1, 0, 2))                      # (B, T, H)
    return hiddens @ params["w_lin_t"] + params["b_lin"]        # (B, T, V)


# -----------------------------------------------------------------------------
# Deterministic parameter init (shapes match the nn.Module __init__).
# -----------------------------------------------------------------------------
def init_params(key, embed_size, hidden_size, vocab_size):
    ks = jax.random.split(key, 7)
    s = 0.1
    return {
        "embedding": s * jax.random.normal(ks[0], (vocab_size, embed_size), jnp.float32),
        # stored pre-transposed for the kernels: W_ih (4H,E) -> (E,4H), etc.
        "w_ih_t": s * jax.random.normal(ks[1], (embed_size, 4 * hidden_size), jnp.float32),
        "w_hh_t": s * jax.random.normal(ks[2], (hidden_size, 4 * hidden_size), jnp.float32),
        "b_gates": (s * jax.random.normal(ks[3], (1, 4 * hidden_size), jnp.float32)
                    + s * jax.random.normal(ks[4], (1, 4 * hidden_size), jnp.float32)),
        "w_lin_t": s * jax.random.normal(ks[5], (hidden_size, vocab_size), jnp.float32),
        "b_lin": s * jax.random.normal(ks[6], (1, vocab_size), jnp.float32),
    }
    # NOTE: self.dropout is defined in __init__ but never applied in forward(),
    # so no dropout is implemented here.


if __name__ == "__main__":
    # Small shapes implied by the forward pass.
    B, E, H, V, Tc = 2, 32, 32, 64, 8   # batch, embed, hidden, vocab, caption len

    key = jax.random.PRNGKey(0)
    k_par, k_feat, k_cap = jax.random.split(key, 3)

    params = init_params(k_par, E, H, V)
    features = jax.random.normal(k_feat, (B, E), jnp.float32)
    captions = jax.random.randint(k_cap, (B, Tc), 0, V, dtype=jnp.int32)

    # time_chunk=4 -> grid of 2 time chunks: exercises the cross-chunk h/c carry.
    out = decoder_rnn_forward(features, captions, params, time_chunk=4)
    out = jax.block_until_ready(out)

    ref = decoder_rnn_reference(features, captions, params)
    assert out.shape == (B, Tc, V), out.shape
    assert jnp.allclose(out, ref, rtol=1e-4, atol=1e-4), "mismatch vs JAX reference"

    print("KERNEL_OK")
</pallas_src>

<mosaic_0001>
module attributes {stable_mosaic.version = 11 : i64} {
  func.func @_input_proj_kernel(%arg0: i32, %arg1: memref<4x8x128xf32, #tpu.memory_space<vmem>>, %arg2: memref<128x512xf32, #tpu.memory_space<vmem>>, %arg3: memref<1x512xf32, #tpu.memory_space<vmem>>, %arg4: memref<4x8x512xf32, #tpu.memory_space<vmem>>) attributes {dimension_semantics = [#tpu.dimension_semantics<parallel>], iteration_bounds = array<i64: 2>, scalar_prefetch = 0 : i64, scratch_operands = 0 : i64, tpu.core_type = #tpu.core_type<tc>, window_params = [{transform_indices = @transform_0, window_bounds = array<i64: 4, 8, 128>}, {pipeline_mode = #tpu.pipeline_mode<synchronous>, transform_indices = @transform_1, window_bounds = array<i64: 128, 512>}, {pipeline_mode = #tpu.pipeline_mode<synchronous>, transform_indices = @transform_2, window_bounds = array<i64: 1, 512>}, {transform_indices = @transform_3, window_bounds = array<i64: 4, 8, 512>}]} {
    %c0 = arith.constant 0 : index
    %c0_0 = arith.constant 0 : index
    %c0_1 = arith.constant 0 : index
    %0 = vector.load %arg1[%c0, %c0_0, %c0_1] : memref<4x8x128xf32, #tpu.memory_space<vmem>>, vector<4x8x128xf32>
    %1 = vector.shape_cast %0 : vector<4x8x128xf32> to vector<32x128xf32>
    %c0_2 = arith.constant 0 : index
    %c0_3 = arith.constant 0 : index
    %2 = vector.load %arg2[%c0_2, %c0_3] : memref<128x512xf32, #tpu.memory_space<vmem>>, vector<128x512xf32>
    %cst = arith.constant dense<0.000000e+00> : vector<32x512xf32>
    %3 = tpu.matmul %1, %2, %cst {dimension_numbers = #tpu.dot_dimension_numbers<[1], [0], [0], [1], [0, 0, 1, 1], [], []>} : vector<32x128xf32>, vector<128x512xf32>, vector<32x512xf32> -> vector<32x512xf32>
    %c0_4 = arith.constant 0 : index
    %c0_5 = arith.constant 0 : index
    %4 = vector.load %arg3[%c0_4, %c0_5] : memref<1x512xf32, #tpu.memory_space<vmem>>, vector<1x512xf32>
    %5 = vector.broadcast %4 : vector<1x512xf32> to vector<32x512xf32>
    %6 = arith.addf %3, %5 : vector<32x512xf32>
    %7 = vector.shape_cast %6 : vector<32x512xf32> to vector<4x8x512xf32>
    %c0_6 = arith.constant 0 : index
    %c0_7 = arith.constant 0 : index
    %c0_8 = arith.constant 0 : index
    %8 = vector.load %arg4[%c0_6, %c0_7, %c0_8] : memref<4x8x512xf32, #tpu.memory_space<vmem>>, vector<4x8x512xf32>
    tpu.vector_store %arg4[%c0_6, %c0_7, %c0_8], %7 {strides = array<i32>} : memref<4x8x512xf32, #tpu.memory_space<vmem>>, vector<4x8x512xf32>,
    return
  }
  func.func @transform_0(%arg0: i32) -> (i32, i32, i32) {
    %c0_i32 = arith.constant 0 : i32
    %c0_i32_0 = arith.constant 0 : i32
    %c0_i32_1 = arith.constant 0 : i32
    return %arg0, %c0_i32, %c0_i32_0 : i32, i32, i32
  }
  func.func @transform_1(%arg0: i32) -> (i32, i32) {
    %c0_i32 = arith.constant 0 : i32
    %c0_i32_0 = arith.constant 0 : i32
    %c0_i32_1 = arith.constant 0 : i32
    return %c0_i32, %c0_i32_0 : i32, i32
  }
  func.func @transform_2(%arg0: i32) -> (i32, i32) {
    %c0_i32 = arith.constant 0 : i32
    %c0_i32_0 = arith.constant 0 : i32
    %c0_i32_1 = arith.constant 0 : i32
    return %c0_i32, %c0_i32_0 : i32, i32
  }
  func.func @transform_3(%arg0: i32) -> (i32, i32, i32) {
    %c0_i32 = arith.constant 0 : i32
    %c0_i32_0 = arith.constant 0 : i32
    %c0_i32_1 = arith.constant 0 : i32
    return %arg0, %c0_i32, %c0_i32_0 : i32, i32, i32
  }
}

</mosaic_0001>

<bundles_post_ra>
// kernel: tpu_custom_call.1
= control target key start
LH: loop header
LB: loop body
LE: loop exit
PB: predicated region body
PF: predicated region fallthrough
CT: control target
= control target key end

     0   :  { %8 = vsyncpa [#allocation3], 0  ;;  %s1108_s0 = inlined_call_operand.hbm [shape: f32[8,8,128], index: 0, kind: input, shape index: {}]   ;;  %s1109_s1 = inlined_call_operand.hbm [shape: f32[128,512], index: 1, kind: input, shape index: {}]   ;;  %s1110_s2 = inlined_call_operand.hbm [shape: f32[1,512], index: 2, kind: input, shape index: {}]   ;;  %s1111_s3 = inlined_call_operand.hbm [shape: f32[8,8,512], index: 3, kind: output, shape index: {}]  }
   0x1   :  { %10 = vsyncpa [#allocation3 + $0x1], 0 }
   0x2   :  { %11 = vsyncpa [#allocation6], 0 }
   0x3   :  { %12 = vsyncpa [#allocation4], 0 }
   0x4   :  { %14 = vsyncpa [#allocation4 + $0x1], 0  ;;  %s886_s12 = smov 0   ;;  %s888_s13 = smov 0  }
   0x5   :  { %s890_s14 = smov 0   ;;  %s892_s15 = smov 0  }
   0x6 LB: > { %s907_s16 = sadd.s32 4294967295, %s853_s15   ;;  %s609_s17 = sadd.s32 4294967294, %s853_s15   ;;  %s853_s15 = sphi %s892_s15, %s1133_s15   ;;  %s849_s14 = sphi %s890_s14, %s1132_s14   ;;  %s845_s13 = sphi %s888_s13, %s1131_s13   ;;  %s841_s12 = sphi %s886_s12, %s1130_s12  }
   0x7   : > { %p40_p0 = scmp.ne.s32.totalorder %s845_s13, %s841_s12  ;;  %p1112_p1 = scmp.eq.s32.totalorder %s907_s16, 0 }
   0x8   : > { %p112_p3 = scmp.eq.s32.totalorder %s609_s17, 1  ;;  %p610_p5 = scmp.ge.s32.totalorder %s853_s15, 1 }
   0x9   : > { %p916_p4 = por %p1112_p1, %p40_p0  ;;  %p119_p7 = scmp.lt.s32.totalorder %s853_s15, 3 }
   0xa   : > { %p921_p6 = por %p112_p3, %p40_p0  ;;  %s855_s21 = smov [#allocation5]  }
   0xb   : > { %s1116_s18 = scalar_select %p916_p4, 1, 0 }
   0xc   : > { %s1117_s19 = scalar_select %p921_p6, 1, 0 }
   0xd   : > { %p926_p8 = pnand %p610_p5, %p119_p7  ;;  %s131_s22 = sshll.u32 %s855_s21, 4  ;;  %s132_s22 = int_to_ptr.vmem [resolvable:$true] %s131_s22 }
   0xe   : > { %s856_s24 = smov [#allocation7]   ;;  %s716_s26 = scalar_lea.vmem %s132_s22, 8192 }
   0xf   : > { %s1118_s20 = scalar_select %p926_p8, 1, 0 }
  0x10   : > { %p643_p9 = pneg %p926_p8  ;;  %s145_s25 = sshll.u32 %s856_s24, 4  ;;  %s146_s25 = int_to_ptr.vmem [resolvable:$true] %s145_s25 }
  0x11   : > { %p717_p13 = scmp.ne.s32.totalorder %s132_s22, %s716_s26  ;;  %p724_p5 = scmp.lt.s32.totalorder %s132_s22, %s132_s22 }
  0x12   : > { %p935_p11 = pnand %p643_p9, %p1112_p1  ;;  %p725_p7 = scmp.lt.s32.totalorder %s716_s26, %s716_s26 }
  0x14   : > { %p707_p12 = pneg %p935_p11  ;;  %p726_p10 = por %p725_p7, %p724_p5 }
  0x16   : > { %p719_p0 = pnand %p717_p13, %p707_p12 }
  0x18   : > { %p720_p3 = pneg %p719_p0 }
  0x1a   : > { %p727_p9 = pnand %p726_p10, %p720_p3 }
  0x1c   : > { %730 = shalt.err (!%p727_p9)
}
  0x1d   : > { %s857_s27 = smov 512   ;;  %s858_s28 = smov 32  }
  0x1e   : > { %646 = dma.hbm_to_vmem [thread:$0]  (!%p935_p11), %s1109_s1, 8192, %s132_s22, [#allocation6], %s857_s27, %s857_s27, %s858_s28  }
  0x1f   : > { %s742_s4 = scalar_lea.vmem %s146_s25, 64  ;;  %p750_p2 = scmp.lt.s32.totalorder %s146_s25, %s146_s25 }
  0x20   : > { %p743_p1 = scmp.ne.s32.totalorder %s146_s25, %s742_s4  ;;  %p751_p6 = scmp.lt.s32.totalorder %s742_s4, %s742_s4 }
  0x22   : > { %p745_p13 = pnand %p743_p1, %p707_p12  ;;  %p752_p5 = por %p751_p6, %p750_p2 }
  0x24   : > { %p746_p0 = pneg %p745_p13 }
  0x26   : > { %p753_p10 = pnand %p752_p5, %p746_p0 }
  0x28   : > { %756 = shalt.err (!%p753_p10)
}
  0x29   : > { %649 = dma.hbm_to_vmem [thread:$0]  (!%p935_p11), %s1110_s2, 64, %s146_s25, [#allocation6]  }
  0x2a   : > { %s958_s7 = sadd.s32 1, %s853_s15   ;;  %s27_s8 = sadd.s32 1, %s849_s14 }
  0x2b   : > { %s24_s9 = ssub.s32 %s853_s15, %s958_s7  ;;  %p34_p1 = scmp.ne.s32.totalorder %s849_s14, %s845_s13 }
  0x2c   : > { %p25_p2 = scmp.eq.s32.totalorder %s24_s9, 0  ;;  %p35_p6 = scmp.eq.s32.totalorder %s853_s15, 0 }
  0x2d   : > { %p1120_p12 = scmp.eq.s32.totalorder %s907_s16, 1  ;;  %p660_p7 = scmp.lt.s32.totalorder %s853_s15, 2 }
  0x2e   : > { %s974_s11 = scalar_select %p25_p2, %s849_s14, %s27_s8  }
  0x2f   : > { %p968_p3 = por %p1120_p12, %p34_p1  ;;  %p36_p9 = por %p35_p6, %p34_p1 }
  0x30   : > { %s156_s17 = sand.u32 1, %s849_s14   ;;  %s628_s22 = sshll.u32 %s853_s15, 9 }
  0x31   : > { %s1121_s10 = scalar_select %p968_p3, 1, 0 }
  0x32   : > { %s614_s21 = sshll.u32 %s156_s17, 5  ;;  %s981_s25 = scalar_lea.hbm %s1108_s0, %s628_s22 }
  0x33   : > { %s160_s26 = scalar_lea.vmem [#allocation2], %s614_s21  ;;  %p985_p11 = pnand %p660_p7, %p36_p9 }
  0x34   : > { %s167_s27 = sshll.u32 %s160_s26, 4  ;;  %s989_s29 = scalar_lea.sflag [#allocation3], %s156_s17  ;;  %s983_s27 = int_to_ptr.vmem [resolvable:$true] %s167_s27 }
  0x35   : > { %s757_s30 = scalar_lea.hbm %s981_s25, 512  ;;  %p759_p0 = pneg %p985_p11 }
  0x36   : > { %p758_p13 = scmp.ne.s32.totalorder %s981_s25, %s757_s30  ;;  %s762_s6 = scalar_lea.hbm %s1108_s0, 1024 }
  0x37   : > { %p763_p1 = scmp.lt.s32.totalorder %s981_s25, %s1108_s0  ;;  %p764_p2 = scmp.lt.s32.totalorder %s762_s6, %s757_s30 }
  0x38   : > { %p760_p5 = pnand %p759_p0, %p758_p13 }
  0x39   : > { %p765_p6 = por %p764_p2, %p763_p1 }
  0x3a   : > { %p761_p10 = pneg %p760_p5 }
  0x3c   : > { %p766_p12 = pnand %p765_p6, %p761_p10 }
  0x3e   : > { %769 = shalt.err (!%p766_p12)
}
  0x3f   : > { %s770_s17 = scalar_lea.vmem %s983_s27, 512  ;;  %s859_s21 = smov [#allocation2]  }
  0x40   : > { %p771_p7 = scmp.ne.s32.totalorder %s983_s27, %s770_s17  ;;  %s775_s22 = sshll.u32 %s859_s21, 4  ;;  %s776_s22 = int_to_ptr.vmem [resolvable:$false] %s775_s22 }
  0x41   : > { %s777_s23 = scalar_lea.vmem %s776_s22, 1024  ;;  %p778_p5 = scmp.lt.s32.totalorder %s983_s27, %s776_s22 }
  0x42   : > { %p773_p9 = pnand %p771_p7, %p759_p0  ;;  %p779_p3 = scmp.lt.s32.totalorder %s777_s23, %s770_s17 }
  0x44   : > { %p774_p13 = pneg %p773_p9  ;;  %p780_p4 = por %p779_p3, %p778_p5 }
  0x46   : > { %p781_p8 = pnand %p780_p4, %p774_p13 }
  0x48   : > { %784 = shalt.err (!%p781_p8)
}
  0x49   : > { %s860_s24 = smov 128   ;;  %s861_s26 = smov 8  }
  0x4a   : > { %653 = dma.hbm_to_vmem [thread:$0]  (!%p985_p11), %s981_s25, 512, %s983_s27, %s989_s29, %s860_s24, %s860_s24, %s861_s26  }
  0x4b   : > { %p1123_p0 = scmp.ne.s32.totalorder %s1118_s20, 0 }
  0x4c   : > { %s1013_s30 = sand.u32 (!%p1123_p0), 1, %s845_s13   ;;  %p1124_p4 = scmp.ne.s32.totalorder (!%p1123_p0), %s1116_s18, 0 }
  0x4d   : > { %179 = sbr.rel (%p1123_p0) target bundleno = 343 (0x157), region = 32  ;;  %s618_s4 = sshll.u32 (!%p1123_p0), %s1013_s30, 5 }
  0x4e   : > { %s182_s5 = scalar_lea.sflag (!%p1123_p0), [#allocation3], %s1013_s30  ;;  %s1017_s6 = scalar_lea.vmem (!%p1123_p0), [#allocation2], %s618_s4 }
  0x52   : > { %828 = dma.done.wait (%p1124_p4), %s182_s5, 512  }
  0x53   : > { %830 = vsyncadd (%p1124_p4), %s182_s5, 4294966784  ;;  %p1125_p8 = scmp.eq.s32.totalorder %s907_s16, 0 }
  0x55   : > { %832 = dma.done.wait (%p1125_p8), [#allocation6], 8256   ;;  %p1126_p3 = pmov %p1125_p8 }
  0x56   : > { %v862_v0 = vmov 0.0   ;;  %v283_v1 = vld [vmem:[#allocation5 + $0x1e8] sm:$0xff]  ;;  %v285_v2 = vld [vmem:[#allocation5 + $0x1f8] sm:$0xff]  ;;  %v282_v3 = vld [vmem:[#allocation5 + $0x1e0] sm:$0xff]  ;;  %s621_s18 = sshll.u32 %s1013_s30, 7  ;;  %s630_s25 = sshll.u32 %s907_s16, 11 }
  0x57   : > { %834 = vsyncadd (%p1126_p3), [#allocation6], 4294959040  ;;  %372 = vmatprep.mubr.f32.mxu0 %v862_v0  ;;  %461 = vmatprep.mubr.f32.mxu1 %v862_v0  ;;  %v284_v4 = vld [vmem:[#allocation5 + $0x1f0] sm:$0xff]  ;;  %v279_v5 = vld [vmem:[#allocation5 + $0x1c8] sm:$0xff]  ;;  %s1040_s20 = scalar_lea.vmem [#allocation8], %s621_s18  ;;  %s1059_s8 = scalar_lea.hbm %s1111_s3, %s630_s25 }
  0x58   : > { %308 = vmatprep.subr.mxu0 %v283_v1  ;;  %397 = vmatprep.subr.mxu1 %v285_v2  ;;  %v281_v6 = vld [vmem:[#allocation5 + $0x1d8] sm:$0xff]  ;;  %v278_v7 = vld [vmem:[#allocation5 + $0x1c0] sm:$0xff]  ;;  %v280_v8 = vld [vmem:[#allocation5 + $0x1d0] sm:$0xff]  ;;  %s517_s27 = sshll.u32 %s1040_s20, 4  ;;  %s503_s16 = scalar_lea.sflag [#allocation4], %s1013_s30  ;;  %s1061_s27 = int_to_ptr.vmem [resolvable:$true] %s517_s27 }
  0x59   : > { %309 = vmatpush1.msra.mxu0 %v282_v3  ;;  %398 = vmatpush1.msra.mxu1 %v284_v4  ;;  %v275_v9 = vld [vmem:[#allocation5 + $0x1a8] sm:$0xff]  ;;  %v277_v10 = vld [vmem:[#allocation5 + $0x1b8] sm:$0xff]  ;;  %v274_v11 = vld [vmem:[#allocation5 + $0x1a0] sm:$0xff]  ;;  %s785_s9 = scalar_lea.vmem %s1061_s27, 2048  ;;  %p1127_p10 = scmp.ne.s32.totalorder %s1121_s10, 0 }
  0x5a   : > { %310 = vmatprep.subr.mxu0 %v279_v5  ;;  %399 = vmatprep.subr.mxu1 %v281_v6  ;;  %v276_v12 = vld [vmem:[#allocation5 + $0x1b0] sm:$0xff]  ;;  %v271_v13 = vld [vmem:[#allocation5 + $0x188] sm:$0xff]  ;;  %v273_v14 = vld [vmem:[#allocation5 + $0x198] sm:$0xff]  ;;  %v288_v6 = vlaneseq  ;;  %p786_p11 = scmp.ne.s32.totalorder %s1061_s27, %s785_s9  ;;  %s863_s17 = smov [#allocation8]  }
  0x5b   : > { %311 = vmatpush1.msra.mxu0 %v278_v7  ;;  %400 = vmatpush1.msra.mxu1 %v280_v8  ;;  %v270_v15 = vld [vmem:[#allocation5 + $0x180] sm:$0xff]  ;;  %v272_v16 = vld [vmem:[#allocation5 + $0x190] sm:$0xff]  ;;  %v267_v17 = vld [vmem:[#allocation5 + $0x168] sm:$0xff]  ;;  %s789_s21 = sshll.u32 %s863_s17, 4  ;;  %s790_s21 = int_to_ptr.vmem [resolvable:$false] %s789_s21 }
  0x5c   : > { %312 = vmatprep.subr.mxu0 %v275_v9  ;;  %401 = vmatprep.subr.mxu1 %v277_v10  ;;  %v269_v18 = vld [vmem:[#allocation5 + $0x178] sm:$0xff]  ;;  %v266_v19 = vld [vmem:[#allocation5 + $0x160] sm:$0xff]  ;;  %v268_v20 = vld [vmem:[#allocation5 + $0x170] sm:$0xff]  ;;  %v289_v7 = vshrl.u32 %v288_v6, 7  ;;  %p787_p1 = pnand %p786_p11, %p1127_p10  ;;  %s791_s22 = scalar_lea.vmem %s790_s21, 4096 }
  0x5d   : > { %313 = vmatpush1.msra.mxu0 %v274_v11  ;;  %402 = vmatpush1.msra.mxu1 %v276_v12  ;;  %v263_v21 = vld [vmem:[#allocation5 + $0x148] sm:$0xff]  ;;  %v265_v22 = vld [vmem:[#allocation5 + $0x158] sm:$0xff]  ;;  %v262_v23 = vld [vmem:[#allocation5 + $0x140] sm:$0xff]  ;;  %p792_p6 = scmp.lt.s32.totalorder %s1061_s27, %s790_s21  ;;  %p793_p12 = scmp.lt.s32.totalorder %s791_s22, %s785_s9 }
  0x5e   : > { %314 = vmatprep.subr.mxu0 %v271_v13  ;;  %403 = vmatprep.subr.mxu1 %v273_v14  ;;  %v264_v24 = vld [vmem:[#allocation5 + $0x150] sm:$0xff]  ;;  %v259_v25 = vld [vmem:[#allocation5 + $0x128] sm:$0xff]  ;;  %v261_v26 = vld [vmem:[#allocation5 + $0x138] sm:$0xff]  ;;  %v290_v8 = vsub.s32 0, %v289_v7  ;;  %v298_v9 = vsub.s32 2, %v289_v7  ;;  %v294_v11 = vsub.s32 1, %v289_v7  ;;  %p788_p2 = pneg %p787_p1 }
  0x5f   : > { %315 = vmatpush1.msra.mxu0 %v270_v15  ;;  %404 = vmatpush1.msra.mxu1 %v272_v16  ;;  %v258_v27 = vld [vmem:[#allocation5 + $0x120] sm:$0xff]  ;;  %v260_v28 = vld [vmem:[#allocation5 + $0x130] sm:$0xff]  ;;  %v255_v29 = vld [vmem:[#allocation5 + $0x108] sm:$0xff]  ;;  %v302_v12 = vsub.s32 3, %v289_v7  ;;  %p794_p7 = por %p793_p12, %p792_p6 }
  0x60   : > { %316 = vmatprep.subr.mxu0 %v267_v17  ;;  %405 = vmatprep.subr.mxu1 %v269_v18  ;;  %v257_v30 = vld [vmem:[#allocation5 + $0x118] sm:$0xff]  ;;  %v254_v31 = vld [vmem:[#allocation5 + $0x100] sm:$0xff]  ;;  %v256_v32 = vld [vmem:[#allocation5 + $0x110] sm:$0xff] }
  0x61   : > { %317 = vmatpush1.msra.mxu0 %v266_v19  ;;  %406 = vmatpush1.msra.mxu1 %v268_v20  ;;  %v251_v33 = vld [vmem:[#allocation5 + $0xe8] sm:$0xff]  ;;  %v253_v34 = vld [vmem:[#allocation5 + $0xf8] sm:$0xff]  ;;  %v250_v35 = vld [vmem:[#allocation5 + $0xe0] sm:$0xff]  ;;  %p795_p9 = pnand %p794_p7, %p788_p2 }
  0x62   : > { %318 = vmatprep.subr.mxu0 %v263_v21  ;;  %407 = vmatprep.subr.mxu1 %v265_v22  ;;  %v252_v36 = vld [vmem:[#allocation5 + $0xf0] sm:$0xff]  ;;  %v247_v37 = vld [vmem:[#allocation5 + $0xc8] sm:$0xff]  ;;  %v249_v38 = vld [vmem:[#allocation5 + $0xd8] sm:$0xff] }
  0x63   : > { %319 = vmatpush1.msra.mxu0 %v262_v23  ;;  %408 = vmatpush1.msra.mxu1 %v264_v24  ;;  %v246_v39 = vld [vmem:[#allocation5 + $0xc0] sm:$0xff]  ;;  %v248_v40 = vld [vmem:[#allocation5 + $0xd0] sm:$0xff]  ;;  %v243_v41 = vld [vmem:[#allocation5 + $0xa8] sm:$0xff] }
  0x64   : > { %320 = vmatprep.subr.mxu0 %v259_v25  ;;  %409 = vmatprep.subr.mxu1 %v261_v26  ;;  %v245_v42 = vld [vmem:[#allocation5 + $0xb8] sm:$0xff]  ;;  %v242_v43 = vld [vmem:[#allocation5 + $0xa0] sm:$0xff]  ;;  %v244_v44 = vld [vmem:[#allocation5 + $0xb0] sm:$0xff] }
  0x65   : > { %321 = vmatpush1.msra.mxu0 %v258_v27  ;;  %410 = vmatpush1.msra.mxu1 %v260_v28  ;;  %v239_v45 = vld [vmem:[#allocation5 + $0x88] sm:$0xff]  ;;  %v241_v46 = vld [vmem:[#allocation5 + $0x98] sm:$0xff]  ;;  %v238_v47 = vld [vmem:[#allocation5 + $0x80] sm:$0xff] }
  0x66   : > { %322 = vmatprep.subr.mxu0 %v255_v29  ;;  %411 = vmatprep.subr.mxu1 %v257_v30  ;;  %v240_v48 = vld [vmem:[#allocation5 + $0x90] sm:$0xff]  ;;  %v235_v49 = vld [vmem:[#allocation5 + $0x68] sm:$0xff]  ;;  %v237_v50 = vld [vmem:[#allocation5 + $0x78] sm:$0xff] }
  0x67   : > { %323 = vmatpush1.msra.mxu0 %v254_v31  ;;  %412 = vmatpush1.msra.mxu1 %v256_v32  ;;  %v234_v51 = vld [vmem:[#allocation5 + $0x60] sm:$0xff]  ;;  %v236_v52 = vld [vmem:[#allocation5 + $0x70] sm:$0xff]  ;;  %v231_v53 = vld [vmem:[#allocation5 + $0x48] sm:$0xff] }
  0x68   : > { %324 = vmatprep.subr.mxu0 %v251_v33  ;;  %413 = vmatprep.subr.mxu1 %v253_v34  ;;  %v233_v54 = vld [vmem:[#allocation5 + $0x58] sm:$0xff]  ;;  %v230_v55 = vld [vmem:[#allocation5 + $0x40] sm:$0xff]  ;;  %v232_v56 = vld [vmem:[#allocation5 + $0x50] sm:$0xff] }
  0x69   : > { %325 = vmatpush1.msra.mxu0 %v250_v35  ;;  %414 = vmatpush1.msra.mxu1 %v252_v36  ;;  %v227_v57 = vld [vmem:[#allocation5 + $0x28] sm:$0xff]  ;;  %v229_v58 = vld [vmem:[#allocation5 + $0x38] sm:$0xff]  ;;  %v226_v59 = vld [vmem:[#allocation5 + $0x20] sm:$0xff] }
  0x6a   : > { %326 = vmatprep.subr.mxu0 %v247_v37  ;;  %415 = vmatprep.subr.mxu1 %v249_v38  ;;  %v228_v60 = vld [vmem:[#allocation5 + $0x30] sm:$0xff]  ;;  %v223_v61 = vld [vmem:[#allocation5 + $0x8] sm:$0xff]  ;;  %v225_v62 = vld [vmem:[#allocation5 + $0x18] sm:$0xff] }
  0x6b   : > { %327 = vmatpush1.msra.mxu0 %v246_v39  ;;  %416 = vmatpush1.msra.mxu1 %v248_v40  ;;  %v222_v63 = vld [vmem:[#allocation5] sm:$0xff]  ;;  %v224_v1 = vld [vmem:[#allocation5 + $0x10] sm:$0xff]  ;;  %v219_v3 = vld [vmem:[%s1017_s6 + $0x8] sm:$0xff] }
  0x6c   : > { %328 = vmatprep.subr.mxu0 %v243_v41  ;;  %417 = vmatprep.subr.mxu1 %v245_v42  ;;  %v218_v2 = vld [vmem:[%s1017_s6] sm:$0xff]  ;;  %v220_v4 = vld [vmem:[%s1017_s6 + $0x10] sm:$0xff]  ;;  %v221_v5 = vld [vmem:[%s1017_s6 + $0x18] sm:$0xff] }
  0x6d   : > { %329 = vmatpush1.msra.mxu0 %v242_v43  ;;  %418 = vmatpush1.msra.mxu1 %v244_v44  ;;  %v286_v10 = vld [vmem:[#allocation7] sm:$0xf] }
  0x6e   : > { %330 = vmatprep.subr.mxu0 %v239_v45  ;;  %419 = vmatprep.subr.mxu1 %v241_v46  ;;  %v291_v13 = vrot.slane %v286_v10, %v290_v8  ;;  %v299_v14 = vrot.slane %v286_v10, %v298_v9  ;;  %v295_v15 = vrot.slane %v286_v10, %v294_v11 }
  0x6f   : > { %331 = vmatpush1.msra.mxu0 %v238_v47  ;;  %420 = vmatpush1.msra.mxu1 %v240_v48  ;;  %v303_v16 = vrot.slane %v286_v10, %v302_v12 }
  0x70   : > { %332 = vmatprep.subr.mxu0 %v235_v49  ;;  %421 = vmatprep.subr.mxu1 %v237_v50 }
  0x71   : > { %333 = vmatpush1.msra.mxu0 %v234_v51  ;;  %422 = vmatpush1.msra.mxu1 %v236_v52 }
  0x72   : > { %334 = vmatprep.subr.mxu0 %v231_v53  ;;  %423 = vmatprep.subr.mxu1 %v233_v54 }
  0x73   : > { %335 = vmatpush1.msra.mxu0 %v230_v55  ;;  %424 = vmatpush1.msra.mxu1 %v232_v56 }
  0x74   : > { %336 = vmatprep.subr.mxu0 %v227_v57  ;;  %425 = vmatprep.subr.mxu1 %v229_v58 }
  0x75   : > { %337 = vmatpush1.msra.mxu0 %v226_v59  ;;  %426 = vmatpush1.msra.mxu1 %v228_v60 }
  0x76   : > { %338 = vmatprep.subr.mxu0 %v223_v61  ;;  %427 = vmatprep.subr.mxu1 %v225_v62 }
  0x77   : > { %339 = vmatpush1.msra.mxu0 %v222_v63  ;;  %428 = vmatpush1.msra.mxu1 %v224_v1 }
  0x78   : > { %373 = vmatmul.mubr.f32.vlgmr.msra.gmra.mxu0 %v218_v2  ;;  %462 = vmatmul.mubr.f32.vlgmr.msra.gmra.mxu1 %v218_v2 }
  0x79   : > { %378 = vmatprep.mubr.f32.mxu0 %v862_v0  ;;  %467 = vmatprep.mubr.f32.mxu1 %v862_v0 }
  0x7c   : > { %379 = vmatmul.mubr.f32.gmra.mxu0 %v219_v3  ;;  %468 = vmatmul.mubr.f32.gmra.mxu1 %v219_v3 }
  0x7d   : > { %384 = vmatprep.mubr.f32.mxu0 %v862_v0  ;;  %473 = vmatprep.mubr.f32.mxu1 %v862_v0 }
  0x80   : > { %385 = vmatmul.mubr.f32.gmra.mxu0 %v220_v4  ;;  %474 = vmatmul.mubr.f32.gmra.mxu1 %v220_v4 }
  0x81   : > { %390 = vmatprep.mubr.f32.mxu0 %v862_v0  ;;  %479 = vmatprep.mubr.f32.mxu1 %v862_v0 }
  0x84   : > { %391 = vmatmul.mubr.f32.gmra.mxu0 %v221_v5  ;;  %480 = vmatmul.mubr.f32.gmra.mxu1 %v221_v5 }
 0x138   : > { %v374_v17 = vpop.f32.mrf.mxu0  ;;  %v463_v18 = vpop.f32.mrf.mxu1 }
 0x139   : > { %v375_v19 = vadd.f32 %v374_v17, %v291_v13  ;;  %v464_v20 = vadd.f32 %v463_v18, %v299_v14 }
 0x13a   : > { %v376_v0 = vpop.f32.mrf.mxu0  ;;  %v465_v21 = vpop.f32.mrf.mxu1 }
 0x13b   : > { %486 = vst [vmem:[%s1040_s20] sm:$0xff] %v375_v19  ;;  %488 = vst [vmem:[%s1040_s20 + $0x10] sm:$0xff] %v464_v20  ;;  %v377_v22 = vadd.f32 %v376_v0, %v295_v15  ;;  %v466_v23 = vadd.f32 %v465_v21, %v303_v16 }
 0x13c   : > { %v380_v24 = vpop.f32.mrf.mxu0  ;;  %v469_v25 = vpop.f32.mrf.mxu1 }
 0x13d   : > { %487 = vst [vmem:[%s1040_s20 + $0x8] sm:$0xff] %v377_v22  ;;  %489 = vst [vmem:[%s1040_s20 + $0x18] sm:$0xff] %v466_v23  ;;  %v381_v26 = vadd.f32 %v380_v24, %v291_v13  ;;  %v470_v27 = vadd.f32 %v469_v25, %v299_v14 }
 0x13e   : > { %v382_v28 = vpop.f32.mrf.mxu0  ;;  %v471_v29 = vpop.f32.mrf.mxu1 }
 0x13f   : > { %490 = vst [vmem:[%s1040_s20 + $0x20] sm:$0xff] %v381_v26  ;;  %492 = vst [vmem:[%s1040_s20 + $0x30] sm:$0xff] %v470_v27  ;;  %v383_v30 = vadd.f32 %v382_v28, %v295_v15  ;;  %v472_v31 = vadd.f32 %v471_v29, %v303_v16 }
 0x140   : > { %v386_v32 = vpop.f32.mrf.mxu0  ;;  %v475_v33 = vpop.f32.mrf.mxu1 }
 0x141   : > { %491 = vst [vmem:[%s1040_s20 + $0x28] sm:$0xff] %v383_v30  ;;  %493 = vst [vmem:[%s1040_s20 + $0x38] sm:$0xff] %v472_v31  ;;  %v387_v34 = vadd.f32 %v386_v32, %v291_v13  ;;  %v476_v35 = vadd.f32 %v475_v33, %v299_v14 }
 0x142   : > { %v388_v36 = vpop.f32.mrf.mxu0  ;;  %v477_v37 = vpop.f32.mrf.mxu1 }
 0x143   : > { %494 = vst [vmem:[%s1040_s20 + $0x40] sm:$0xff] %v387_v34  ;;  %496 = vst [vmem:[%s1040_s20 + $0x50] sm:$0xff] %v476_v35  ;;  %v389_v38 = vadd.f32 %v388_v36, %v295_v15  ;;  %v478_v39 = vadd.f32 %v477_v37, %v303_v16 }
 0x144   : > { %v392_v40 = vpop.f32.mrf.mxu0  ;;  %v481_v41 = vpop.f32.mrf.mxu1 }
 0x145   : > { %495 = vst [vmem:[%s1040_s20 + $0x48] sm:$0xff] %v389_v38  ;;  %497 = vst [vmem:[%s1040_s20 + $0x58] sm:$0xff] %v478_v39  ;;  %v393_v42 = vadd.f32 %v392_v40, %v291_v13  ;;  %v482_v43 = vadd.f32 %v481_v41, %v299_v14 }
 0x146   : > { %v394_v44 = vpop.f32.mrf.mxu0  ;;  %v483_v45 = vpop.f32.mrf.mxu1 }
 0x147   : > { %498 = vst [vmem:[%s1040_s20 + $0x60] sm:$0xff] %v393_v42  ;;  %500 = vst [vmem:[%s1040_s20 + $0x70] sm:$0xff] %v482_v43  ;;  %v395_v46 = vadd.f32 %v394_v44, %v295_v15  ;;  %v484_v47 = vadd.f32 %v483_v45, %v303_v16 }
 0x149   : > { %499 = vst [vmem:[%s1040_s20 + $0x68] sm:$0xff] %v395_v46  ;;  %501 = vst [vmem:[%s1040_s20 + $0x78] sm:$0xff] %v484_v47 }
 0x14a   : > { %798 = shalt.err (!%p795_p9)
}
 0x14b   : > { %s799_s23 = scalar_lea.hbm %s1059_s8, 2048  ;;  %s803_s4 = scalar_lea.hbm %s1111_s3, 4096 }
 0x14c   : > { %p800_p13 = scmp.ne.s32.totalorder %s1059_s8, %s799_s23  ;;  %p804_p4 = scmp.lt.s32.totalorder %s1059_s8, %s1111_s3 }
 0x14d   : > { %p805_p8 = scmp.lt.s32.totalorder %s803_s4, %s799_s23 }
 0x14e   : > { %p801_p5 = pnand %p800_p13, %p1127_p10 }
 0x14f   : > { %p806_p3 = por %p805_p8, %p804_p4 }
 0x150   : > { %p802_p0 = pneg %p801_p5 }
 0x152   : > { %p807_p11 = pnand %p806_p3, %p802_p0 }
 0x154   : > { %810 = shalt.err (!%p807_p11)
}
 0x155   : > { %s864_s18 = smov 512   ;;  %s865_s20 = smov 32  }
 0x156   : > { %641 = dma.vmem_to_hbm [thread:$0]  (%p1127_p10), %s1061_s27, 2048, %s1059_s8, %s503_s16, %s864_s18, %s864_s18, %s865_s20  }
 0x157 PF: > { %s532_s25 = sand.u32 1, %s841_s12   ;;  %p1128_p1 = scmp.ne.s32.totalorder %s1117_s19, 0 }
 0x158   : > { %p1129_p2 = scmp.ge.s32.totalorder %s853_s15, 2  ;;  %s533_s28 = scalar_lea.sflag [#allocation4], %s532_s25 }
 0x15a   : > { %p655_p6 = pnand %p1129_p2, %p1128_p1 }
 0x15c   : > { %p656_p12 = pneg %p655_p6 }
 0x15e   : > { %836 = dma.done.wait (%p656_p12), %s533_s28, 2048  }
 0x15f   : > { %838 = vsyncadd (%p656_p12), %s533_s28, 4294965248  ;;  %p17_p7 = scmp.ge.s32.totalorder %s958_s7, 4   ;;  %s1130_s12 = smov %s845_s13 }
 0x160   : > { %s1131_s13 = smov %s849_s14  ;;  %s1132_s14 = smov %s974_s11 }
 0x161   : > { %s1133_s15 = smov %s958_s7  ;;  %19 = sbr.rel (!%p17_p7) target bundleno = 6 (0x6), region = 85 }
 0x166   :  { %538 = vsyncpa [#allocation3], 1 }
 0x167   :  { %540 = vsyncpa [#allocation3 + $0x1], 1 }
 0x168   :  { %541 = vsyncpa [#allocation6], 1 }
 0x169   :  { %542 = vsyncpa [#allocation4], 1 }
 0x16a   :  { %544 = vsyncpa [#allocation4 + $0x1], 1 }

</bundles_post_ra>
